<compile_context>
chip_gen: v6e
topology: v6e:2x2x1
jax: 0.10.0
libtpu: 0.0.40
codegen_flags: <defaults>
</compile_context>

<pallas_src>
import functools

import jax
import jax.numpy as jnp
from jax.experimental import pallas as pl
from jax.experimental.pallas import tpu as pltpu


def _round_up(x, m):
    return ((x + m - 1) // m) * m


def _mlp_critic_kernel(obs_ref, w1_ref, b1_ref, w2_ref, b2_ref, w3_ref, b3_ref,
                       out_ref):
    # obs tile: [TILE_B, obs_dim] in the matmul dtype; weights/biases are full,
    # VMEM-resident (constant index maps); b3 is an SMEM scalar.
    x = obs_ref[...]

    # Hidden layer 1: MXU matmul (bf16 operands by default), f32 accumulate,
    # f32 bias add + tanh (VPU/EUP stay f32 -> fine on v5e as well).
    h1 = jnp.dot(x, w1_ref[...], preferred_element_type=jnp.float32) + b1_ref[...]
    h1 = jnp.tanh(h1)

    # Hidden layer 2.
    h2 = jnp.dot(h1.astype(w2_ref.dtype), w2_ref[...],
                 preferred_element_type=jnp.float32) + b2_ref[...]
    h2 = jnp.tanh(h2)

    # Output head (out_features == 1): VPU multiply + cross-lane reduce instead
    # of an N=1 MXU matmul.  Result is lane-major -> lane-dense (1,1,TILE_B) store.
    v = jnp.sum(h2 * w3_ref[...], axis=-1) + b3_ref[0]        # [TILE_B] f32
    out_ref[...] = v[None, None, :].astype(out_ref.dtype)


def _choose_batch_tiling(B, obs_dim, h1_dim, h2_dim, matmul_bytes,
                         *, soft_cap_rows=2048, min_tiles=8,
                         vmem_budget_bytes=12 * 1024 * 1024):
    """Pick (tile_b, num_tiles) given a lane-padding-aware VMEM budget."""
    lanes = lambda d: _round_up(max(int(d), 1), 128)
    # Per-row VMEM footprint: double-buffered obs tile + f32 temporaries
    # (h1, its matmul-dtype cast, h2 and the head product), all lane-padded.
    per_row = (2 * lanes(obs_dim) * matmul_bytes
               + lanes(h1_dim) * (4 + matmul_bytes)
               + lanes(h2_dim) * 8)
    vmem_cap = max(8, (vmem_budget_bytes // per_row) // 8 * 8)
    cap = min(soft_cap_rows, vmem_cap)

    num_tiles = pl.cdiv(B, cap)
    if B >= min_tiles * 8:
        num_tiles = max(num_tiles, min_tiles)        # keep the pipeline busy
    if num_tiles > 1 and num_tiles % 2:
        num_tiles += 1                               # balance v7x's two TCs

    tile_b = _round_up(pl.cdiv(B, num_tiles), 8)
    if tile_b >= 128:                                # unmasked lane-dense stores
        tile_b = _round_up(tile_b, 128)
    tile_b = min(tile_b, _round_up(B, 8))
    num_tiles = pl.cdiv(B, tile_b)
    return tile_b, num_tiles


def mlp_critic_forward(obs, params, *, matmul_dtype=jnp.bfloat16):
    """obs: [B, obs_dim].  params: dict of w1,b1,w2,b2,w3,b3.

    Returns value estimates of shape [B] (== torch.squeeze(v_net(obs), -1)).
    """
    B, obs_dim = obs.shape
    w1, b1 = params["w1"], params["b1"]
    w2, b2 = params["w2"], params["b2"]
    w3, b3 = params["w3"], params["b3"]
    h1_dim, h2_dim = w1.shape[1], w2.shape[1]

    # Cast MXU operands once here (not per grid step inside the kernel).
    obs_mm = obs.astype(matmul_dtype)
    w1_mm = w1.astype(matmul_dtype)
    w2_mm = w2.astype(matmul_dtype)
    b1_f = b1.reshape(1, h1_dim).astype(jnp.float32)
    b2_f = b2.reshape(1, h2_dim).astype(jnp.float32)
    # Head weights stay f32: they feed the VPU multiply/reduce, not the MXU.
    w3_row = w3.reshape(1, h2_dim).astype(jnp.float32)
    b3_s = b3.reshape(1).astype(jnp.float32)          # SMEM scalar

    mm_bytes = jnp.dtype(matmul_dtype).itemsize
    tile_b, num_tiles = _choose_batch_tiling(B, obs_dim, h1_dim, h2_dim, mm_bytes)
    b_pad = num_tiles * tile_b                        # padded only in out_shape

    def resident(a):
        return pl.BlockSpec(a.shape, lambda i, _nd=a.ndim: (0,) * _nd)

    param_bytes = sum(int(p.size) * p.dtype.itemsize
                      for p in (w1_mm, b1_f, w2_mm, b2_f, w3_row, b3_s))
    cost = pl.CostEstimate(
        flops=2 * b_pad * (obs_dim * h1_dim + h1_dim * h2_dim + h2_dim),
        transcendentals=b_pad * (h1_dim + h2_dim),
        bytes_accessed=b_pad * obs_dim * mm_bytes + b_pad * 4 + param_bytes,
    )

    out = pl.pallas_call(
        _mlp_critic_kernel,
        out_shape=jax.ShapeDtypeStruct((num_tiles, 1, tile_b), jnp.float32),
        grid=(num_tiles,),
        in_specs=[
            # Streamed obs tiles; partial last block reads OOB rows (garbage),
            # whose outputs never escape the final [:B] slice.
            pl.BlockSpec((tile_b, obs_dim), lambda i: (i, 0)),
            resident(w1_mm), resident(b1_f),
            resident(w2_mm), resident(b2_f),
            resident(w3_row),
            pl.BlockSpec(memory_space=pltpu.MemorySpace.SMEM),   # b3 scalar
        ],
        out_specs=pl.BlockSpec((1, 1, tile_b), lambda i: (i, 0, 0)),
        compiler_params=pltpu.CompilerParams(
            dimension_semantics=("parallel",),
            vmem_limit_bytes=32 * 1024 * 1024),
        cost_estimate=cost,
    )(obs_mm, w1_mm, b1_f, w2_mm, b2_f, w3_row, b3_s)

    # (num_tiles, 1, TILE_B) -> (B,)   [== torch.squeeze(value, dim=-1)]
    return out.reshape(b_pad)[:B]


def init_mlp_critic_params(key, obs_dim, hidden_sizes):
    """Deterministic init mimicking nn.Linear's U(-1/sqrt(fan_in), 1/sqrt(fan_in))."""
    sizes = [obs_dim] + list(hidden_sizes) + [1]
    params = {}
    for j in range(len(sizes) - 1):
        fan_in, fan_out = sizes[j], sizes[j + 1]
        key, kw, kb = jax.random.split(key, 3)
        bound = 1.0 / (fan_in ** 0.5)
        w = jax.random.uniform(kw, (fan_in, fan_out), jnp.float32, -bound, bound)
        b = jax.random.uniform(kb, (1, fan_out), jnp.float32, -bound, bound)
        params[f"w{j + 1}"] = w
        params[f"b{j + 1}"] = b
    return params


def _reference_forward(obs, params, matmul_dtype=jnp.float32):
    """Pure-JAX reference; matmul_dtype mirrors the kernel's operand casts."""
    h1 = jnp.tanh(jnp.dot(obs.astype(matmul_dtype),
                          params["w1"].astype(matmul_dtype),
                          preferred_element_type=jnp.float32) + params["b1"])
    h2 = jnp.tanh(jnp.dot(h1.astype(matmul_dtype),
                          params["w2"].astype(matmul_dtype),
                          preferred_element_type=jnp.float32) + params["b2"])
    v = h2 @ params["w3"] + params["b3"]
    return jnp.squeeze(v, axis=-1)


if __name__ == "__main__":
    key = jax.random.PRNGKey(0)
    batch, obs_dim, hidden_sizes = 8, 16, (32, 32)

    k_obs, k_params = jax.random.split(key)
    obs = jax.random.normal(k_obs, (batch, obs_dim), jnp.float32)
    params = init_mlp_critic_params(k_params, obs_dim, hidden_sizes)

    # Small batch (single tile, no padding).
    value = jax.block_until_ready(mlp_critic_forward(obs, params))
    assert value.shape == (batch,), value.shape
    ref_bf16 = _reference_forward(obs, params, matmul_dtype=jnp.bfloat16)
    ref_f32 = _reference_forward(obs, params)
    assert jnp.allclose(value, ref_bf16, atol=5e-3, rtol=5e-3), (value, ref_bf16)
    assert jnp.allclose(value, ref_f32, atol=1e-1, rtol=1e-1), (value, ref_f32)

    # f32-operand path still matches the f32 reference tightly.
    value_f32 = jax.block_until_ready(
        mlp_critic_forward(obs, params, matmul_dtype=jnp.float32))
    assert jnp.allclose(value_f32, ref_f32, atol=1e-5, rtol=1e-5)

    # Larger, non-divisible batch: multi-tile grid + partial last block (no pad copy).
    k_obs2, _ = jax.random.split(k_obs)
    big_b = 10000
    obs_big = jax.random.normal(k_obs2, (big_b, obs_dim), jnp.float32)
    value_big = jax.block_until_ready(mlp_critic_forward(obs_big, params))
    assert value_big.shape == (big_b,), value_big.shape
    ref_big_bf16 = _reference_forward(obs_big, params, matmul_dtype=jnp.bfloat16)
    assert jnp.allclose(value_big, ref_big_bf16, atol=5e-3, rtol=5e-3)

    print("KERNEL_OK")
</pallas_src>

<mosaic_0001>
module attributes {stable_mosaic.version = 11 : i64} {
  func.func @_mlp_critic_kernel(%arg0: i32, %arg1: memref<8x16xbf16, #tpu.memory_space<vmem>>, %arg2: memref<16x32xbf16, #tpu.memory_space<vmem>>, %arg3: memref<1x32xf32, #tpu.memory_space<vmem>>, %arg4: memref<32x32xbf16, #tpu.memory_space<vmem>>, %arg5: memref<1x32xf32, #tpu.memory_space<vmem>>, %arg6: memref<1x32xf32, #tpu.memory_space<vmem>>, %arg7: memref<1xf32, #tpu.memory_space<smem>>, %arg8: memref<1x1x8xf32, #tpu.memory_space<vmem>>) attributes {dimension_semantics = [#tpu.dimension_semantics<parallel>], iteration_bounds = array<i64: 1>, scalar_prefetch = 0 : i64, scratch_operands = 0 : i64, tpu.core_type = #tpu.core_type<tc>, window_params = [{transform_indices = @transform_0, window_bounds = array<i64: 8, 16>}, {pipeline_mode = #tpu.pipeline_mode<synchronous>, transform_indices = @transform_1, window_bounds = array<i64: 16, 32>}, {pipeline_mode = #tpu.pipeline_mode<synchronous>, transform_indices = @transform_2, window_bounds = array<i64: 1, 32>}, {pipeline_mode = #tpu.pipeline_mode<synchronous>, transform_indices = @transform_3, window_bounds = array<i64: 32, 32>}, {pipeline_mode = #tpu.pipeline_mode<synchronous>, transform_indices = @transform_4, window_bounds = array<i64: 1, 32>}, {pipeline_mode = #tpu.pipeline_mode<synchronous>, transform_indices = @transform_5, window_bounds = array<i64: 1, 32>}, {transform_indices = @transform_6, window_bounds = array<i64: 1>}, {transform_indices = @transform_7, window_bounds = array<i64: 1, 1, 8>}]} {
    %c0 = arith.constant 0 : index
    %c0_0 = arith.constant 0 : index
    %0 = vector.load %arg1[%c0, %c0_0] : memref<8x16xbf16, #tpu.memory_space<vmem>>, vector<8x16xbf16>
    %c0_1 = arith.constant 0 : index
    %c0_2 = arith.constant 0 : index
    %1 = vector.load %arg2[%c0_1, %c0_2] : memref<16x32xbf16, #tpu.memory_space<vmem>>, vector<16x32xbf16>
    %cst = arith.constant dense<0.000000e+00> : vector<8x32xf32>
    %2 = tpu.matmul %0, %1, %cst {dimension_numbers = #tpu.dot_dimension_numbers<[1], [0], [0], [1], [0, 0, 1, 1], [], []>} : vector<8x16xbf16>, vector<16x32xbf16>, vector<8x32xf32> -> vector<8x32xf32>
    %c0_3 = arith.constant 0 : index
    %c0_4 = arith.constant 0 : index
    %3 = vector.load %arg3[%c0_3, %c0_4] : memref<1x32xf32, #tpu.memory_space<vmem>>, vector<1x32xf32>
    %4 = vector.broadcast %3 : vector<1x32xf32> to vector<8x32xf32>
    %5 = arith.addf %2, %4 : vector<8x32xf32>
    %6 = math.tanh %5 : vector<8x32xf32>
    %7 = arith.truncf %6 : vector<8x32xf32> to vector<8x32xbf16>
    %c0_5 = arith.constant 0 : index
    %c0_6 = arith.constant 0 : index
    %8 = vector.load %arg4[%c0_5, %c0_6] : memref<32x32xbf16, #tpu.memory_space<vmem>>, vector<32x32xbf16>
    %cst_7 = arith.constant dense<0.000000e+00> : vector<8x32xf32>
    %9 = tpu.matmul %7, %8, %cst_7 {dimension_numbers = #tpu.dot_dimension_numbers<[1], [0], [0], [1], [0, 0, 1, 1], [], []>} : vector<8x32xbf16>, vector<32x32xbf16>, vector<8x32xf32> -> vector<8x32xf32>
    %c0_8 = arith.constant 0 : index
    %c0_9 = arith.constant 0 : index
    %10 = vector.load %arg5[%c0_8, %c0_9] : memref<1x32xf32, #tpu.memory_space<vmem>>, vector<1x32xf32>
    %11 = vector.broadcast %10 : vector<1x32xf32> to vector<8x32xf32>
    %12 = arith.addf %9, %11 : vector<8x32xf32>
    %13 = math.tanh %12 : vector<8x32xf32>
    %c0_10 = arith.constant 0 : index
    %c0_11 = arith.constant 0 : index
    %14 = vector.load %arg6[%c0_10, %c0_11] : memref<1x32xf32, #tpu.memory_space<vmem>>, vector<1x32xf32>
    %15 = vector.broadcast %14 : vector<1x32xf32> to vector<8x32xf32>
    %16 = arith.mulf %13, %15 : vector<8x32xf32>
    %cst_12 = arith.constant dense<0.000000e+00> : vector<8xf32>
    %17 = vector.multi_reduction <add>, %16, %cst_12 [1] : vector<8x32xf32> to vector<8xf32>
    %c0_13 = arith.constant 0 : index
    %18 = memref.load %arg7[%c0_13] : memref<1xf32, #tpu.memory_space<smem>>
    %19 = vector.broadcast %18 : f32 to vector<8xf32>
    %20 = arith.addf %17, %19 : vector<8xf32>
    %21 = vector.shape_cast %20 : vector<8xf32> to vector<1x1x8xf32>
    %c0_14 = arith.constant 0 : index
    %c0_15 = arith.constant 0 : index
    %c0_16 = arith.constant 0 : index
    %22 = vector.load %arg8[%c0_14, %c0_15, %c0_16] : memref<1x1x8xf32, #tpu.memory_space<vmem>>, vector<1x1x8xf32>
    tpu.vector_store %arg8[%c0_14, %c0_15, %c0_16], %21 {strides = array<i32>} : memref<1x1x8xf32, #tpu.memory_space<vmem>>, vector<1x1x8xf32>,
    return
  }
  func.func @transform_0(%arg0: i32) -> (i32, i32) {
    %c0_i32 = arith.constant 0 : i32
    %c0_i32_0 = arith.constant 0 : i32
    return %arg0, %c0_i32 : i32, i32
  }
  func.func @transform_1(%arg0: i32) -> (i32, i32) {
    %c0_i32 = arith.constant 0 : i32
    %c0_i32_0 = arith.constant 0 : i32
    %c0_i32_1 = arith.constant 0 : i32
    return %c0_i32, %c0_i32_0 : i32, i32
  }
  func.func @transform_2(%arg0: i32) -> (i32, i32) {
    %c0_i32 = arith.constant 0 : i32
    %c0_i32_0 = arith.constant 0 : i32
    %c0_i32_1 = arith.constant 0 : i32
    return %c0_i32, %c0_i32_0 : i32, i32
  }
  func.func @transform_3(%arg0: i32) -> (i32, i32) {
    %c0_i32 = arith.constant 0 : i32
    %c0_i32_0 = arith.constant 0 : i32
    %c0_i32_1 = arith.constant 0 : i32
    return %c0_i32, %c0_i32_0 : i32, i32
  }
  func.func @transform_4(%arg0: i32) -> (i32, i32) {
    %c0_i32 = arith.constant 0 : i32
    %c0_i32_0 = arith.constant 0 : i32
    %c0_i32_1 = arith.constant 0 : i32
    return %c0_i32, %c0_i32_0 : i32, i32
  }
  func.func @transform_5(%arg0: i32) -> (i32, i32) {
    %c0_i32 = arith.constant 0 : i32
    %c0_i32_0 = arith.constant 0 : i32
    %c0_i32_1 = arith.constant 0 : i32
    return %c0_i32, %c0_i32_0 : i32, i32
  }
  func.func @transform_6(%arg0: i32) -> i32 {
    %c0_i32 = arith.constant 0 : i32
    %c0_i32_0 = arith.constant 0 : i32
    return %c0_i32 : i32
  }
  func.func @transform_7(%arg0: i32) -> (i32, i32, i32) {
    %c0_i32 = arith.constant 0 : i32
    %c0_i32_0 = arith.constant 0 : i32
    %c0_i32_1 = arith.constant 0 : i32
    return %arg0, %c0_i32, %c0_i32_0 : i32, i32, i32
  }
}

</mosaic_0001>

<bundles_post_ra>
// kernel: tpu_custom_call.1
= control target key start
LH: loop header
LB: loop body
LE: loop exit
PB: predicated region body
PF: predicated region fallthrough
CT: control target
= control target key end

     0   :  { %13 = vsyncpa [#allocation4], 0  ;;  %s438_s0 = inlined_call_operand.hbm [shape: bf16[8,16], index: 0, kind: input, shape index: {}]   ;;  %s439_s1 = inlined_call_operand.hbm [shape: bf16[16,32], index: 1, kind: input, shape index: {}]   ;;  %s440_s2 = inlined_call_operand.vmem [shape: f32[1,32], index: 2, kind: input, shape index: {}]   ;;  %s441_s3 = inlined_call_operand.hbm [shape: bf16[32,32], index: 3, kind: input, shape index: {}]   ;;  %s442_s4 = inlined_call_operand.vmem [shape: f32[1,32], index: 4, kind: input, shape index: {}]   ;;  %s443_s5 = inlined_call_operand.vmem [shape: f32[1,32], index: 5, kind: input, shape index: {}]   ;;  %s444_s6 = inlined_call_operand.<no memory space> [shape: f32[1], index: 6, kind: input, shape index: {}]   ;;  %s445_s7 = inlined_call_operand.hbm [shape: f32[1,1,8], index: 7, kind: output, shape index: {}]  }
   0x1   :  { %14 = vsyncpa [#allocation7], 0 }
   0x2   :  { %15 = vsyncpa [#allocation5], 0  ;;  %s366_s24 = smov [#allocation6]  }
   0x3   :  { %s31_s25 = sshll.u32 %s366_s24, 4  ;;  %s32_s25 = int_to_ptr.vmem [resolvable:$true] %s31_s25 }
   0x4   :  { %s288_s26 = scalar_lea.vmem %s32_s25, 128  ;;  %p293_p1 = scmp.lt.s32.totalorder %s32_s25, %s32_s25 }
   0x5   :  { %p289_p0 = scmp.ne.s32.totalorder %s32_s25, %s288_s26  ;;  %p294_p2 = scmp.lt.s32.totalorder %s288_s26, %s288_s26 }
   0x7   :  { %p295_p3 = por %p294_p2, %p293_p1 }
   0x9   :  { %p296_p4 = pnand %p295_p3, %p289_p0 }
   0xb   :  { %299 = shalt.err (!%p296_p4)
}
   0xc   :  { %s367_s27 = smov 64   ;;  %s368_s28 = smov 4  }
   0xd   :  { %37 = dma.hbm_to_vmem [thread:$0]  %s439_s1, 128, %s32_s25, [#allocation7], %s367_s27, %s367_s27, %s368_s28  }
   0xe   :  { %s369_s8 = smov [#allocation3]   ;;  %s370_s10 = smov [#allocation8]  }
   0xf   :  { %s22_s9 = sshll.u32 %s369_s8, 4  ;;  %s45_s11 = sshll.u32 %s370_s10, 4  ;;  %s23_s9 = int_to_ptr.vmem [resolvable:$true] %s22_s9  ;;  %s46_s11 = int_to_ptr.vmem [resolvable:$true] %s45_s11 }
  0x10   :  { %s308_s12 = scalar_lea.vmem %s23_s9, 64  ;;  %p313_p6 = scmp.lt.s32.totalorder %s23_s9, %s23_s9 }
  0x11   :  { %p309_p5 = scmp.ne.s32.totalorder %s23_s9, %s308_s12  ;;  %p314_p7 = scmp.lt.s32.totalorder %s308_s12, %s308_s12 }
  0x13   :  { %p315_p8 = por %p314_p7, %p313_p6 }
  0x15   :  { %p316_p9 = pnand %p315_p8, %p309_p5 }
  0x17   :  { %319 = shalt.err (!%p316_p9)
}
  0x18   :  { %25 = dma.hbm_to_vmem [thread:$0]  %s438_s0, 64, %s23_s9, [#allocation4]  }
  0x19   :  { %s328_s15 = scalar_lea.vmem %s46_s11, 256  ;;  %p333_p11 = scmp.lt.s32.totalorder %s46_s11, %s46_s11 }
  0x1a   :  { %p329_p10 = scmp.ne.s32.totalorder %s46_s11, %s328_s15  ;;  %p334_p12 = scmp.lt.s32.totalorder %s328_s15, %s328_s15 }
  0x1c   :  { %p335_p13 = por %p334_p12, %p333_p11 }
  0x1e   :  { %p336_p0 = pnand %p335_p13, %p329_p10 }
  0x20   :  { %339 = shalt.err (!%p336_p0)
}
  0x21   :  { %51 = dma.hbm_to_vmem [thread:$0]  %s441_s3, 256, %s46_s11, [#allocation7], %s367_s27, %s367_s27, %s368_s28  }
  0x22   :  { %360 = dma.done.wait [#allocation4], 64  }
  0x23   :  { %361 = vsyncadd [#allocation4], 4294967232 }
  0x24   :  { %362 = dma.done.wait [#allocation7], 384  }
  0x25   :  { %363 = vsyncadd [#allocation7], 4294966912  ;;  %v371_v0 = vmov 0.0   ;;  %vm372_vm0 = vmmov 0   ;;  %v273_v1 = vld [vmem:[#allocation6] sm:$0xff]   ;;  %vm84_vm1 = vcmask 130048   ;;  %v213_v23 = vlaneseq }
  0x26   :  { %251 = vmatprep.subr.bf16.mxu0 %v371_v0  ;;  %253 = vmatprep.mubr.msk.bf16.mxu0 %vm372_vm0, %v371_v0  ;;  %v68_v2 = vld [vmem:[#allocation3] sm:$0xf]  ;;  %v274_v3 = vld [vmem:[#allocation8 + $0x8] sm:$0xff]   ;;  %v275_v4 = vld [vmem:[#allocation8] sm:$0xff]   ;;  %vm153_vm2 = vcmask 261120   ;;  %v210_v26 = vstv %s444_s6  ;;  %vm220_vm3 = vcmask 57344  }
  0x27   :  { %257 = vmatprep.subr.bf16.mxu1 %v371_v0  ;;  %261 = vmatprep.mubr.msk.bf16.mxu1 %vm372_vm0, %v371_v0  ;;  %v238_v5 = vld [vmem:[%s440_s2] ss:$0 sm:$0xff]  ;;  %v214_v24 = vand.u32 127, %v213_v23  ;;  %v216_v25 = vshrl.u32 %v213_v23, 7 }
  0x28   :  { %252 = vmatpush3.bf16.msra.mxu0 %v273_v1  ;;  %258 = vmatpush3.bf16.msra.mxu1 %v274_v3  ;;  %v241_v13 = vld [vmem:[%s442_s4] ss:$0 sm:$0xff]  ;;  %s373_s4 = smov [#allocation9]  }
  0x29   :  { %259 = vmatprep.subr.bf16.mxu1 %v371_v0  ;;  %v245_v19 = vld [vmem:[%s443_s5] ss:$0 sm:$0xff]  ;;  %v217_v27 = vsub.s32 %v214_v24, %v216_v25  ;;  %s228_s22 = sshll.u32 %s373_s4, 4  ;;  %s229_s22 = int_to_ptr.vmem [resolvable:$true] %s228_s22 }
  0x2a   :  { %s340_s5 = scalar_lea.vmem %s229_s22, 16  ;;  %s344_s23 = scalar_lea.vmem %s229_s22, 32 }
  0x2b   :  { %254 = vmatmul.mubr.msk.bf16.vlgmr.msra.gmra.mxu0 %vm84_vm1, %v68_v2  ;;  %p341_p1 = scmp.ne.s32.totalorder %s229_s22, %s340_s5  ;;  %p345_p2 = scmp.lt.s32.totalorder %s229_s22, %s229_s22 }
  0x2c   :  { %260 = vmatpush3.bf16.msra.mxu1 %v275_v4  ;;  %p346_p3 = scmp.lt.s32.totalorder %s344_s23, %s340_s5 }
  0x2e   :  { %p347_p4 = por %p346_p3, %p345_p2 }
  0x30   :  { %p348_p5 = pnand %p347_p4, %p341_p1 }
  0xeb   :  { %v122_v6 = vpop.f32.mrf.mxu0 }
  0xec   :  { %v123_v7 = vadd.f32 %v238_v5, %v122_v6 }
  0xed   :  { %v255_v8 = vpop.f32.mrf.mxu0 }
  0xee   :  { %276 = vtanh.f32 %v123_v7 }
  0xef   :  { %v125_v9 = vpop.f32.mrf.mxu0 }
  0xf1   :  { %v256_v10 = vpop.f32.mrf.mxu0 }
  0xfb   :  { %v277_v11 = vpop.eup %276 }
  0xfc   :  { %v129_v12 = vpack.c.bf16 %v277_v11, %v277_v11 }
  0xfe   :  { %262 = vmatmul.mubr.msk.bf16.vlgmr.msra.gmra.mxu1 %vm153_vm2, %v129_v12 }
 0x1be   :  { %v191_v14 = vpop.f32.mrf.mxu1 }
 0x1bf   :  { %v192_v15 = vadd.f32 %v241_v13, %v191_v14 }
 0x1c0   :  { %v263_v16 = vpop.f32.mrf.mxu1 }
 0x1c1   :  { %278 = vtanh.f32 %v192_v15 }
 0x1c2   :  { %v194_v17 = vpop.f32.mrf.mxu1 }
 0x1c4   :  { %v264_v18 = vpop.f32.mrf.mxu1 }
 0x1ce   :  { %v279_v20 = vpop.eup %278 }
 0x1cf   :  { %v205_v21 = vmul.f32 %v279_v20, %v245_v19 }
 0x1d1   :  { %v206_v22 = vsel %vm153_vm2, %v205_v21, 0.0 }
 0x1d2   :  { %207 = vadd.xlane.f32.xlu0 %v206_v22 }
 0x25b   :  { %v208_v28 = vpop.xlane.xlu0 %207 }
 0x25c   :  { %v211_v29 = vadd.f32 %v210_v26, %v208_v28 }
 0x25e   :  { %v218_v30 = vrot.slane %v211_v29, %v217_v27 }
 0x260   :  { %221 = vst.msk [vmem:[#allocation9] sm:$0x1] %vm220_vm3, %v218_v30 }
 0x261   :  { %351 = shalt.err (!%p348_p5)
}
 0x262   :  { %231 = dma.vmem_to_hbm [thread:$0]  %s229_s22, 16, %s445_s7, [#allocation5]  }
 0x263   :  { %364 = dma.done.wait [#allocation5], 16  }
 0x264   :  { %365 = vsyncadd [#allocation5], 4294967280 }
 0x265   :  { %235 = vsyncpa [#allocation4], 1 }
 0x266   :  { %236 = vsyncpa [#allocation7], 1 }
 0x267   :  { %237 = vsyncpa [#allocation5], 1 }

</bundles_post_ra>
